<compile_context>
chip_gen: v6e
topology: v6e:2x2x1
jax: 0.10.0
libtpu: 0.0.40
codegen_flags: <defaults>
</compile_context>

<pallas_src>
import functools

import jax
import jax.numpy as jnp
from jax import lax
from jax.experimental import pallas as pl
from jax.experimental.pallas import tpu as pltpu


def _pick_tile_s(S: int) -> int:
    # Prefer lane/sublane-friendly tiles; fall back to the whole sequence
    # (block == full array always satisfies the (8,128) constraint).
    for t in (256, 128):
        if S % t == 0:
            return t
    return S


def _bert_embeddings_kernel(
    input_ids_ref,        # SMEM [B, S] int32         (scalar prefetch)
    tt_ref,               # VMEM [1, 1, TILE_S] int32 (token-type ids tile)
    word_hbm_ref,         # HBM  [V, D]               (memory_space=pl.ANY)
    pos_ref,              # VMEM [TILE_S, D]          (position rows for this tile)
    type_ref,             # VMEM [T, D]
    gamma_ref,            # VMEM [1, D]
    beta_ref,             # VMEM [1, D]
    out_ref,              # VMEM [1, TILE_S, D]
    wbuf,                 # VMEM [TILE_S, D] scratch  (gathered word rows)
    sem,                  # DMA semaphore (1,)
    *,
    eps: float,
    tile_s: int,
    n_types: int,
):
    b = pl.program_id(0)
    s_tile = pl.program_id(1)
    s0 = s_tile * tile_s

    # ---- 1) word-embedding row gather: HBM -> VMEM, many row-DMAs in flight ----
    @pl.loop(0, tile_s)
    def _issue(r):
        wid = input_ids_ref[b, s0 + r]
        pltpu.make_async_copy(
            word_hbm_ref.at[pl.ds(wid, 1), :],
            wbuf.at[pl.ds(r, 1), :],
            sem.at[0],
        ).start()

    # ---- 2) token-type embeddings via one-hot x table (MXU), overlaps with DMAs ----
    tid = tt_ref[0]                                                  # (1, TILE_S) int32
    onehot = (
        lax.broadcasted_iota(jnp.int32, (n_types, tile_s), 0) == tid
    ).astype(jnp.float32)                                            # (T, TILE_S)
    te = lax.dot_general(
        onehot,
        type_ref[...].astype(jnp.float32),
        dimension_numbers=(((0,), (0,)), ((), ())),                  # onehot.T @ table
        preferred_element_type=jnp.float32,
    )                                                                # (TILE_S, D)

    # ---- 3) position embeddings: contiguous block, auto-pipelined by BlockSpec ----
    pe = pos_ref[...].astype(jnp.float32)                            # (TILE_S, D)

    # ---- 4) wait for all gathered word rows ----
    @pl.loop(0, tile_s)
    def _wait(r):
        pltpu.make_async_copy(
            word_hbm_ref.at[pl.ds(0, 1), :],
            wbuf.at[pl.ds(r, 1), :],
            sem.at[0],
        ).wait()

    we = wbuf[...].astype(jnp.float32)                               # (TILE_S, D)

    # add1: token_type + position ; add2: (+ inputs_embeds)
    x = te + pe + we

    # ---- 5) LayerNorm over D on the whole slab (f32 math, biased variance) ----
    mean = jnp.mean(x, axis=-1, keepdims=True)
    xc = x - mean
    var = jnp.mean(xc * xc, axis=-1, keepdims=True)
    inv = lax.rsqrt(var + eps)                                       # EUP
    gamma = gamma_ref[...].astype(jnp.float32)                       # (1, D) broadcast
    beta = beta_ref[...].astype(jnp.float32)
    y = xc * inv * gamma + beta

    # Dropout: identity in inference mode.  Dense, unmasked store.
    out_ref[0, :, :] = y.astype(out_ref.dtype)


def bert_embeddings(
    input_ids,            # [B, S] int
    token_type_ids,       # [B, S] int
    word_embeddings,      # [V, D] f32
    position_embeddings,  # [P, D] f32
    type_embeddings,      # [T, D] f32
    ln_gamma,             # [D] f32
    ln_beta,              # [D] f32
    *,
    layer_norm_eps: float = 1e-12,
    out_dtype=jnp.float32,   # set to jnp.bfloat16 to halve HBM write traffic
):
    B, S = input_ids.shape
    V, D = word_embeddings.shape
    P = position_embeddings.shape[0]
    T = type_embeddings.shape[0]
    assert S <= P, "sequence length exceeds max_position_embeddings"

    tile_s = _pick_tile_s(S)
    n_s = S // tile_s

    # Defensive clipping: VMEM/HBM reads are not bounds-checked on TPU.
    ids = jnp.clip(input_ids.astype(jnp.int32), 0, V - 1)
    tts = jnp.clip(token_type_ids.astype(jnp.int32), 0, T - 1).reshape(B, 1, S)
    pos = position_embeddings[:S]          # position_ids = arange(S) -> plain slice
    gamma2 = ln_gamma.reshape(1, D)
    beta2 = ln_beta.reshape(1, D)

    kernel = functools.partial(
        _bert_embeddings_kernel,
        eps=float(layer_norm_eps),
        tile_s=tile_s,
        n_types=T,
    )

    grid_spec = pltpu.PrefetchScalarGridSpec(
        num_scalar_prefetch=1,
        grid=(B, n_s),
        in_specs=[
            pl.BlockSpec((1, 1, tile_s), lambda b, s, ids_ref: (b, 0, s)),  # token-type ids
            pl.BlockSpec(memory_space=pl.ANY),                              # word table (HBM)
            pl.BlockSpec((tile_s, D), lambda b, s, ids_ref: (s, 0)),        # position rows
            pl.BlockSpec((T, D), lambda b, s, ids_ref: (0, 0)),             # type table
            pl.BlockSpec((1, D), lambda b, s, ids_ref: (0, 0)),             # gamma
            pl.BlockSpec((1, D), lambda b, s, ids_ref: (0, 0)),             # beta
        ],
        out_specs=pl.BlockSpec((1, tile_s, D), lambda b, s, ids_ref: (b, s, 0)),
        scratch_shapes=[
            pltpu.VMEM((tile_s, D), word_embeddings.dtype),   # gathered word rows
            pltpu.SemaphoreType.DMA((1,)),                    # shared gather semaphore
        ],
    )

    return pl.pallas_call(
        kernel,
        out_shape=jax.ShapeDtypeStruct((B, S, D), out_dtype),
        grid_spec=grid_spec,
        compiler_params=pltpu.CompilerParams(
            dimension_semantics=("parallel", "parallel"),
        ),
    )(ids, tts, word_embeddings, pos, type_embeddings, gamma2, beta2)


def _reference(input_ids, token_type_ids, word_e, pos_e, type_e, gamma, beta, eps):
    B, S = input_ids.shape
    we = word_e[input_ids]                     # [B,S,D]
    pe = pos_e[jnp.arange(S)][None, :, :]      # [1,S,D]
    te = type_e[token_type_ids]                # [B,S,D]
    x = te + pe + we
    mean = jnp.mean(x, axis=-1, keepdims=True)
    var = jnp.mean((x - mean) ** 2, axis=-1, keepdims=True)
    return (x - mean) / jnp.sqrt(var + eps) * gamma + beta


if __name__ == "__main__":
    # Small synthetic config (matches module constructor args)
    vocab_size = 50
    max_position_embeddings = 16
    dmodel = 32
    pad_token_id = 0
    type_vocab_size = 2
    layer_norm_eps = 1e-12
    B, S = 2, 8

    key = jax.random.PRNGKey(0)
    k_word, k_pos, k_type, k_ids, k_tt = jax.random.split(key, 5)

    word_e = 0.02 * jax.random.normal(k_word, (vocab_size, dmodel), jnp.float32)
    word_e = word_e.at[pad_token_id].set(0.0)   # nn.Embedding padding_idx row zeroed
    pos_e = 0.02 * jax.random.normal(k_pos, (max_position_embeddings, dmodel), jnp.float32)
    type_e = 0.02 * jax.random.normal(k_type, (type_vocab_size, dmodel), jnp.float32)
    ln_gamma = jnp.ones((dmodel,), jnp.float32)
    ln_beta = jnp.zeros((dmodel,), jnp.float32)

    input_ids = jax.random.randint(k_ids, (B, S), 0, vocab_size, jnp.int32)
    token_type_ids = jax.random.randint(k_tt, (B, S), 0, type_vocab_size, jnp.int32)

    out = bert_embeddings(
        input_ids,
        token_type_ids,
        word_e,
        pos_e,
        type_e,
        ln_gamma,
        ln_beta,
        layer_norm_eps=layer_norm_eps,
    )
    out = jax.block_until_ready(out)

    ref = _reference(input_ids, token_type_ids, word_e, pos_e, type_e,
                     ln_gamma, ln_beta, layer_norm_eps)
    assert out.shape == (B, S, dmodel)
    assert jnp.allclose(out, ref, atol=1e-5, rtol=1e-5), "mismatch vs reference"

    print("KERNEL_OK")
</pallas_src>

<mosaic_0001>
module attributes {stable_mosaic.version = 11 : i64} {
  func.func @_bert_embeddings_kernel(%arg0: i32, %arg1: i32, %arg2: memref<2x8xi32, #tpu.memory_space<smem>>, %arg3: memref<1x1x8xi32, #tpu.memory_space<vmem>>, %arg4: memref<50x32xf32, #tpu.memory_space<any>>, %arg5: memref<8x32xf32, #tpu.memory_space<vmem>>, %arg6: memref<2x32xf32, #tpu.memory_space<vmem>>, %arg7: memref<1x32xf32, #tpu.memory_space<vmem>>, %arg8: memref<1x32xf32, #tpu.memory_space<vmem>>, %arg9: memref<1x8x32xf32, #tpu.memory_space<vmem>>, %arg10: memref<8x32xf32, #tpu.memory_space<vmem>>, %arg11: memref<1x!tpu.dma_semaphore, #tpu.memory_space<semaphore_mem>>) attributes {dimension_semantics = [#tpu.dimension_semantics<parallel>, #tpu.dimension_semantics<parallel>], iteration_bounds = array<i64: 2, 1>, scalar_prefetch = 1 : i64, scratch_operands = 2 : i64, tpu.core_type = #tpu.core_type<tc>, window_params = [{transform_indices = @transform_0, window_bounds = array<i64: 1, 1, 8>}, {}, {transform_indices = @transform_2, window_bounds = array<i64: 8, 32>}, {pipeline_mode = #tpu.pipeline_mode<synchronous>, transform_indices = @transform_3, window_bounds = array<i64: 2, 32>}, {pipeline_mode = #tpu.pipeline_mode<synchronous>, transform_indices = @transform_4, window_bounds = array<i64: 1, 32>}, {pipeline_mode = #tpu.pipeline_mode<synchronous>, transform_indices = @transform_5, window_bounds = array<i64: 1, 32>}, {transform_indices = @transform_6, window_bounds = array<i64: 1, 8, 32>}]} {
    %c8_i32 = arith.constant 8 : i32
    %0 = arith.muli %arg1, %c8_i32 : i32
    %c0_i32 = arith.constant 0 : i32
    %c8_i32_0 = arith.constant 8 : i32
    %1 = arith.addi %c0_i32, %c8_i32_0 : i32
    %c1_i32 = arith.constant 1 : i32
    scf.for %arg12 = %c0_i32 to %1 step %c1_i32  : i32 {
      %c1_i32_26 = arith.constant 1 : i32
      %41 = arith.muli %arg12, %c1_i32_26 : i32
      %c0_i32_27 = arith.constant 0 : i32
      %42 = arith.addi %c0_i32_27, %41 : i32
      %43 = arith.addi %0, %42 : i32
      %44 = arith.index_cast %arg0 : i32 to index
      %45 = arith.index_cast %43 : i32 to index
      %46 = memref.load %arg2[%44, %45] : memref<2x8xi32, #tpu.memory_space<smem>>
      %c0_i32_28 = arith.constant 0 : i32
      %c0_i32_29 = arith.constant 0 : i32
      %47 = tpu.memref_slice %arg4[%46, %c0_i32_29] : memref<50x32xf32, #tpu.memory_space<any>> -> memref<1x32xf32, #tpu.memory_space<any>>
      %c0_i32_30 = arith.constant 0 : i32
      %48 = tpu.memref_slice %arg10[%42, %c0_i32_30] : memref<8x32xf32, #tpu.memory_space<vmem>> -> memref<1x32xf32, #tpu.memory_space<vmem>>
      %49 = tpu.memref_slice %arg11[%c0_i32_28] : memref<1x!tpu.dma_semaphore, #tpu.memory_space<semaphore_mem>> -> memref<1x!tpu.dma_semaphore, #tpu.memory_space<semaphore_mem>>
      %50 = tpu.memref_squeeze %49 : memref<1x!tpu.dma_semaphore, #tpu.memory_space<semaphore_mem>> -> memref<!tpu.dma_semaphore, #tpu.memory_space<semaphore_mem>>
      tpu.enqueue_dma source(%47 : memref<1x32xf32, #tpu.memory_space<any>>) target(%48 : memref<1x32xf32, #tpu.memory_space<vmem>>) target_semaphore(%50 : memref<!tpu.dma_semaphore, #tpu.memory_space<semaphore_mem>>)
    }
    %c8_i32_1 = arith.constant 8 : i32
    %c0 = arith.constant 0 : index
    %c0_2 = arith.constant 0 : index
    %c0_3 = arith.constant 0 : index
    %2 = vector.load %arg3[%c0, %c0_2, %c0_3] : memref<1x1x8xi32, #tpu.memory_space<vmem>>, vector<1x1x8xi32>
    %3 = vector.shape_cast %2 : vector<1x1x8xi32> to vector<1x8xi32>
    %4 = tpu.iota {dimensions = array<i32: 0>} : vector<2x8xi32>
    %5 = vector.broadcast %3 : vector<1x8xi32> to vector<2x8xi32>
    %6 = arith.cmpi eq, %4, %5 : vector<2x8xi32>
    %7 = arith.extui %6 : vector<2x8xi1> to vector<2x8xi32>
    %8 = arith.sitofp %7 : vector<2x8xi32> to vector<2x8xf32>
    %c0_4 = arith.constant 0 : index
    %c0_5 = arith.constant 0 : index
    %9 = vector.load %arg6[%c0_4, %c0_5] : memref<2x32xf32, #tpu.memory_space<vmem>>, vector<2x32xf32>
    %cst = arith.constant dense<0.000000e+00> : vector<8x32xf32>
    %10 = tpu.matmul %8, %9, %cst {dimension_numbers = #tpu.dot_dimension_numbers<[0], [0], [1], [1], [0, 1, 1, 1], [], []>} : vector<2x8xf32>, vector<2x32xf32>, vector<8x32xf32> -> vector<8x32xf32>
    %c0_6 = arith.constant 0 : index
    %c0_7 = arith.constant 0 : index
    %11 = vector.load %arg5[%c0_6, %c0_7] : memref<8x32xf32, #tpu.memory_space<vmem>>, vector<8x32xf32>
    %c0_i32_8 = arith.constant 0 : i32
    %c8_i32_9 = arith.constant 8 : i32
    %12 = arith.addi %c0_i32_8, %c8_i32_9 : i32
    %c1_i32_10 = arith.constant 1 : i32
    scf.for %arg12 = %c0_i32_8 to %12 step %c1_i32_10  : i32 {
      %c1_i32_26 = arith.constant 1 : i32
      %41 = arith.muli %arg12, %c1_i32_26 : i32
      %c0_i32_27 = arith.constant 0 : i32
      %42 = arith.addi %c0_i32_27, %41 : i32
      %c0_i32_28 = arith.constant 0 : i32
      %c0_i32_29 = arith.constant 0 : i32
      %c0_i32_30 = arith.constant 0 : i32
      %43 = tpu.memref_slice %arg4[%c0_i32_29, %c0_i32_30] : memref<50x32xf32, #tpu.memory_space<any>> -> memref<1x32xf32, #tpu.memory_space<any>>
      %c0_i32_31 = arith.constant 0 : i32
      %44 = tpu.memref_slice %arg10[%42, %c0_i32_31] : memref<8x32xf32, #tpu.memory_space<vmem>> -> memref<1x32xf32, #tpu.memory_space<vmem>>
      %45 = tpu.memref_slice %arg11[%c0_i32_28] : memref<1x!tpu.dma_semaphore, #tpu.memory_space<semaphore_mem>> -> memref<1x!tpu.dma_semaphore, #tpu.memory_space<semaphore_mem>>
      %46 = tpu.memref_squeeze %45 : memref<1x!tpu.dma_semaphore, #tpu.memory_space<semaphore_mem>> -> memref<!tpu.dma_semaphore, #tpu.memory_space<semaphore_mem>>
      tpu.wait_dma2 semaphore(%46 : memref<!tpu.dma_semaphore, #tpu.memory_space<semaphore_mem>>) src(%43 : memref<1x32xf32, #tpu.memory_space<any>>) dst(%44 : memref<1x32xf32, #tpu.memory_space<vmem>>)
    }
    %c8_i32_11 = arith.constant 8 : i32
    %c0_12 = arith.constant 0 : index
    %c0_13 = arith.constant 0 : index
    %13 = vector.load %arg10[%c0_12, %c0_13] : memref<8x32xf32, #tpu.memory_space<vmem>>, vector<8x32xf32>
    %14 = arith.addf %10, %11 : vector<8x32xf32>
    %15 = arith.addf %14, %13 : vector<8x32xf32>
    %cst_14 = arith.constant dense<0.000000e+00> : vector<8xf32>
    %16 = vector.multi_reduction <add>, %15, %cst_14 [1] : vector<8x32xf32> to vector<8xf32>
    %17 = vector.shape_cast %16 : vector<8xf32> to vector<8x1xf32>
    %cst_15 = arith.constant 3.200000e+01 : f32
    %18 = vector.broadcast %cst_15 : f32 to vector<8x1xf32>
    %19 = arith.divf %17, %18 : vector<8x1xf32>
    %20 = vector.broadcast %19 : vector<8x1xf32> to vector<8x32xf32>
    %21 = arith.subf %15, %20 : vector<8x32xf32>
    %22 = arith.mulf %21, %21 : vector<8x32xf32>
    %cst_16 = arith.constant dense<0.000000e+00> : vector<8xf32>
    %23 = vector.multi_reduction <add>, %22, %cst_16 [1] : vector<8x32xf32> to vector<8xf32>
    %24 = vector.shape_cast %23 : vector<8xf32> to vector<8x1xf32>
    %cst_17 = arith.constant 3.200000e+01 : f32
    %25 = vector.broadcast %cst_17 : f32 to vector<8x1xf32>
    %26 = arith.divf %24, %25 : vector<8x1xf32>
    %cst_18 = arith.constant 9.99999996E-13 : f32
    %27 = vector.broadcast %cst_18 : f32 to vector<8x1xf32>
    %28 = arith.addf %26, %27 : vector<8x1xf32>
    %29 = math.rsqrt %28 : vector<8x1xf32>
    %c0_19 = arith.constant 0 : index
    %c0_20 = arith.constant 0 : index
    %30 = vector.load %arg7[%c0_19, %c0_20] : memref<1x32xf32, #tpu.memory_space<vmem>>, vector<1x32xf32>
    %c0_21 = arith.constant 0 : index
    %c0_22 = arith.constant 0 : index
    %31 = vector.load %arg8[%c0_21, %c0_22] : memref<1x32xf32, #tpu.memory_space<vmem>>, vector<1x32xf32>
    %32 = vector.broadcast %29 : vector<8x1xf32> to vector<8x32xf32>
    %33 = arith.mulf %21, %32 : vector<8x32xf32>
    %34 = vector.broadcast %30 : vector<1x32xf32> to vector<8x32xf32>
    %35 = arith.mulf %33, %34 : vector<8x32xf32>
    %36 = vector.broadcast %31 : vector<1x32xf32> to vector<8x32xf32>
    %37 = arith.addf %35, %36 : vector<8x32xf32>
    %c0_23 = arith.constant 0 : index
    %c0_24 = arith.constant 0 : index
    %c0_25 = arith.constant 0 : index
    %38 = vector.load %arg9[%c0_23, %c0_24, %c0_25] : memref<1x8x32xf32, #tpu.memory_space<vmem>>, vector<1x8x32xf32>
    %39 = vector.shape_cast %38 : vector<1x8x32xf32> to vector<8x32xf32>
    %40 = vector.shape_cast %37 : vector<8x32xf32> to vector<1x8x32xf32>
    tpu.vector_store %arg9[%c0_23, %c0_24, %c0_25], %40 {strides = array<i32>} : memref<1x8x32xf32, #tpu.memory_space<vmem>>, vector<1x8x32xf32>,
    return
  }
  func.func @transform_0(%arg0: i32, %arg1: i32, %arg2: memref<2x8xi32, #tpu.memory_space<smem>>) -> (i32, i32, i32) {
    %c0_i32 = arith.constant 0 : i32
    %c0_i32_0 = arith.constant 0 : i32
    return %arg0, %c0_i32, %arg1 : i32, i32, i32
  }
  func.func @transform_2(%arg0: i32, %arg1: i32, %arg2: memref<2x8xi32, #tpu.memory_space<smem>>) -> (i32, i32) {
    %c0_i32 = arith.constant 0 : i32
    %c0_i32_0 = arith.constant 0 : i32
    return %arg1, %c0_i32 : i32, i32
  }
  func.func @transform_3(%arg0: i32, %arg1: i32, %arg2: memref<2x8xi32, #tpu.memory_space<smem>>) -> (i32, i32) {
    %c0_i32 = arith.constant 0 : i32
    %c0_i32_0 = arith.constant 0 : i32
    %c0_i32_1 = arith.constant 0 : i32
    return %c0_i32, %c0_i32_0 : i32, i32
  }
  func.func @transform_4(%arg0: i32, %arg1: i32, %arg2: memref<2x8xi32, #tpu.memory_space<smem>>) -> (i32, i32) {
    %c0_i32 = arith.constant 0 : i32
    %c0_i32_0 = arith.constant 0 : i32
    %c0_i32_1 = arith.constant 0 : i32
    return %c0_i32, %c0_i32_0 : i32, i32
  }
  func.func @transform_5(%arg0: i32, %arg1: i32, %arg2: memref<2x8xi32, #tpu.memory_space<smem>>) -> (i32, i32) {
    %c0_i32 = arith.constant 0 : i32
    %c0_i32_0 = arith.constant 0 : i32
    %c0_i32_1 = arith.constant 0 : i32
    return %c0_i32, %c0_i32_0 : i32, i32
  }
  func.func @transform_6(%arg0: i32, %arg1: i32, %arg2: memref<2x8xi32, #tpu.memory_space<smem>>) -> (i32, i32, i32) {
    %c0_i32 = arith.constant 0 : i32
    %c0_i32_0 = arith.constant 0 : i32
    return %arg0, %arg1, %c0_i32 : i32, i32, i32
  }
}

</mosaic_0001>

<bundles_post_ra>
// kernel: tpu_custom_call.1
= control target key start
LH: loop header
LB: loop body
LE: loop exit
PB: predicated region body
PF: predicated region fallthrough
CT: control target
= control target key end

     0   :  { %s1010_s0 = inlined_call_operand.vmem [shape: s32[2,8], index: 0, kind: input, shape index: {}]   ;;  %s1011_s1 = inlined_call_operand.vmem [shape: s32[2,1,8], index: 1, kind: input, shape index: {}]   ;;  %s1012_s2 = inlined_call_operand.vmem [shape: f32[50,32], index: 2, kind: input, shape index: {}]   ;;  %s1013_s3 = inlined_call_operand.vmem [shape: f32[8,32], index: 3, kind: input, shape index: {}]   ;;  %s1014_s4 = inlined_call_operand.vmem [shape: f32[2,32], index: 4, kind: input, shape index: {}]   ;;  %s1015_s5 = inlined_call_operand.vmem [shape: f32[1,32], index: 5, kind: input, shape index: {}]   ;;  %s1016_s6 = inlined_call_operand.vmem [shape: f32[1,32], index: 6, kind: input, shape index: {}]   ;;  %s1017_s7 = inlined_call_operand.hbm [shape: f32[2,8,32], index: 7, kind: output, shape index: {}]  }
   0x1   :  { %s12_s26 = sshll.u32 %s1010_s0, 4  ;;  %s13_s26 = int_to_ptr.vmem [resolvable:$true] %s12_s26 }
   0x2   :  { %s724_s27 = scalar_lea.vmem %s13_s26, 32  ;;  %p729_p1 = scmp.lt.s32.totalorder %s13_s26, %s13_s26 }
   0x3   :  { %p725_p0 = scmp.ne.s32.totalorder %s13_s26, %s724_s27  ;;  %p730_p2 = scmp.lt.s32.totalorder %s724_s27, %s724_s27 }
   0x5   :  { %p731_p3 = por %p730_p2, %p729_p1 }
   0x7   :  { %p732_p4 = pnand %p731_p3, %p725_p0 }
   0x9   :  { %735 = shalt.err (!%p732_p4)  }
   0xa   :  { %s834_s28 = smov [#allocation5]  }
   0xb   :  { %15 = dma.vmem_to_smem %s13_s26, 32, %s834_s28, [#allocation4] }
   0xc   :  { %794 = dma.done.wait [#allocation4], 32 }
   0xd   :  { %795 = vsyncadd [#allocation4], 4294967264 }
   0xe   :  { %17 = sfence }
   0xf   :  { %18 = vsyncpa [#allocation7], 0 }
  0x10   :  { %20 = vsyncpa [#allocation7 + $0x1], 0  ;;  %s881_s29 = smov 0   ;;  %s883_s30 = smov 0  }
  0x11   :  { %s885_s0 = smov 0   ;;  %s887_s8 = smov 0  }
  0x12   :  { %s889_s9 = smov 0   ;;  %s891_s10 = smov 0  }
  0x13 LB: > { %1021 = sst [smem:[#allocation12_spill]] %s820_s9  ;;  %s622_s11 = sadd.s32 4294967295, %s824_s10   ;;  %s824_s10 = sphi %s891_s10, %s26_s10   ;;  %s820_s9 = sphi %s889_s9, %s1029_s9   ;;  %s816_s8 = sphi %s887_s8, %s1028_s8   ;;  %s812_s0 = sphi %s885_s0, %s1032_s0   ;;  %s808_s30 = sphi %s883_s30, %s1031_s30   ;;  %s804_s29 = sphi %s881_s29, %s1030_s29  }
  0x14   : > { %s623_s12 = sadd.s32 4294967294, %s824_s10   ;;  %s38_s13 = sadd.s32 1, %s820_s9 }
  0x15   : > { %s164_s14 = sadd.s32 1, %s812_s0  ;;  %p40_p5 = scmp.ge.s32.totalorder %s38_s13, 2 }
  0x16   : > { %p174_p6 = scmp.ne.s32.totalorder %s812_s0, %s808_s30  ;;  %p175_p7 = scmp.eq.s32.totalorder %s622_s11, 1 }
  0x17   : > { %p180_p8 = scmp.ne.s32.totalorder %s808_s30, %s804_s29  ;;  %s1034_s13 = smov (%p40_p5, %s38_s13), 0 }
  0x18   : > { %1022 = sst [smem:[#allocation13_spill]] %s1034_s13  ;;  %p921_p9 = por %p175_p7, %p174_p6 }
  0x19   : > { %p181_p10 = scmp.eq.s32.totalorder %s623_s12, 1  ;;  %s159_s16 = ssub.s32 %s820_s9, %s1034_s13 }
  0x1a   : > { %p627_p11 = scmp.ge.s32.totalorder %s824_s10, 1  ;;  %p162_p12 = scmp.eq.s32.totalorder %s159_s16, 0 }
  0x1b   : > { %p928_p13 = por %p181_p10, %p180_p8  ;;  %p224_p0 = scmp.lt.s32.totalorder %s824_s10, 3 }
  0x1c   : > { %s934_s18 = scalar_select %p162_p12, %s812_s0, %s164_s14  }
  0x1d   : > { %p225_p1 = pnand %p627_p11, %p224_p0 }
  0x1e   : > { %1025 = sst [smem:[#allocation14_spill]] %s934_s18  ;;  %s1018_s19 = sand.u32 (!%p225_p1), 1, %s808_s30  }
  0x1f   : > { %228 = sbr.rel (%p225_p1) target bundleno = 706 (0x2c2), region = 40  ;;  %p257_p2 = scmp.lt.s32.totalorder (!%p225_p1), %s816_s8, 1 }
  0x20   : > { %s940_s20 = sshll.u32 (!%p225_p1), %s1018_s19, 3  ;;  %s826_s26 = smov (!%p225_p1), 0  }
  0x21   : > { %s256_s25 = scalar_lea.vmem (!%p225_p1), [#allocation6], %s940_s20 }
  0x24   : > { %s258_s21 = scalar_select %p257_p2, %s816_s8, 1 }
  0x26   : > { %s262_s24 = scalar_lea.vmem %s1011_s1, %s258_s21 }
  0x27 LB: >> { %s275_s27 = sshra.s32 %s828_s26, 7  ;;  %s280_s28 = sand.u32 127, %s828_s26  ;;  %s828_s26 = sphi %s826_s26, %s273_s26  }
  0x28   : >> { %s277_s11 = sadd.s32 %s816_s8, %s275_s27  ;;  %s284_s18 = scalar_lea.vmem [#allocation2], %s828_s26 }
  0x29   : >> { %s629_s12 = sshll.u32 %s277_s11, 7 }
  0x2a   : >> { %s281_s14 = sadd.s32 %s629_s12, %s280_s28 }
  0x2b   : >> { %s282_s16 = sld [smem:[#allocation5 + %s281_s14]] }
  0x31   : >> { %s283_s9 = scalar_lea.vmem %s1012_s2, %s282_s16 }
  0x32   : >> { %v303_v0 = vld [vmem:[%s283_s9] sm:$0x1] }
  0x33   : >> { %304 = vst [vmem:[%s284_s18] sm:$0x1] %v303_v0 }
  0x34   : >> { %330 = vsyncadd [#allocation3], 16  ;;  %s273_s26 = sadd.s32 1, %s828_s26  }
  0x35   : >> { %p270_p3 = scmp.ge.s32.totalorder %s273_s26, 8  }
  0x36   : > { %v332_v1 = vlaneseq (%p270_p3)  ;;  %v341_v2 = vld [vmem:[%s1014_s4] sm:$0x3] (%p270_p3)  ;;  %v835_v6 = vmov (%p270_p3), 0.0   ;;  %s830_s9 = smov (%p270_p3), 0  }
  0x37   : > { %272 = sbr.rel (!%p270_p3) target bundleno = 39 (0x27), region = 134  ;;  %v342_v3 = vld [vmem:[%s1013_s3] sm:$0xff] (%p270_p3) }
  0x38   : > { %v630_v4 = vld [vmem:[%s262_s24] ss:$0 sm:$0xff] (%p270_p3)  ;;  %v333_v5 = vshrl.u32 (%p270_p3), %v332_v1, 7 }
  0x3a   : > { %vm338_vm0 = vcmp.eq.s32.totalorder (%p270_p3), %v333_v5, %v630_v4 }
  0x3b   : > { %v631_v7 = vsel (%p270_p3), %vm338_vm0, 1.0, %v835_v6 }
  0x3c LB: >> { %796 = dma.done.wait [#allocation3], 16  ;;  %s832_s9 = sphi %s830_s9, %s348_s9  }
  0x3d   : >> { %797 = vsyncadd [#allocation3], 4294967280  ;;  %s348_s9 = sadd.s32 1, %s832_s9  }
  0x3e   : >> { %p345_p4 = scmp.ge.s32.totalorder %s348_s9, 8  }
  0x3f   : > { %353 = vxpose.xlu0.b32.start.end [1/1] (short) (narrow) (%p345_p4), %v631_v7, 8  ;;  %643 = vmatprep.subr.mxu0 (%p345_p4), %v835_v6  ;;  %vm389_vm1 = vcmask (%p345_p4), 1041408   ;;  %vm836_vm2 = vmmov (%p345_p4), 0   ;;  %vm385_vm3 = vcmask (%p345_p4), 15360   ;;  %v352_v10 = vld [vmem:[#allocation2] sm:$0xff] (%p345_p4)  ;;  %vm464_vm4 = vcmask (%p345_p4), 261120  }
  0x40   : > { %347 = sbr.rel (!%p345_p4) target bundleno = 60 (0x3c), region = 145  ;;  %644 = vmatpush3.msk.msra.mxu0 (%p345_p4), %vm389_vm1, %v341_v2  ;;  %645 = vmatprep.mubr.msk.f32.mxu0 (%p345_p4), %vm836_vm2, %v835_v6  ;;  %v634_v24 = vld [vmem:[%s1015_s5] ss:$0 sm:$0xff] (%p345_p4)  ;;  %s637_s26 = sshll.u32 (%p345_p4), %s816_s8, 7 }
  0x41   : > { %v635_v26 = vld [vmem:[%s1016_s6] ss:$0 sm:$0xff] (%p345_p4)  ;;  %s511_s28 = sshll.u32 (%p345_p4), %s256_s25, 4  ;;  %s509_s14 = scalar_lea.hbm (%p345_p4), %s1017_s7, %s637_s26  ;;  %s512_s28 = int_to_ptr.vmem [resolvable:$true] %s511_s28 }
  0x42   : > { %s1026_s16 = sand.u32 (%p345_p4), 1, %s808_s30   ;;  %s736_s22 = scalar_lea.vmem (%p345_p4), %s512_s28, 128 }
  0x43   : > { %s497_s21 = scalar_lea.sflag (%p345_p4), [#allocation7], %s1026_s16  ;;  %p737_p5 = scmp.ne.s32.totalorder (%p345_p4), %s512_s28, %s736_s22 }
  0x44   : > { %s837_s8 = smov (%p345_p4), [#allocation6]  }
  0x45   : > { %p738_p6 = pnand %p737_p5, %p921_p9  ;;  %s740_s23 = sshll.u32 %s837_s8, 4  ;;  %s741_s23 = int_to_ptr.vmem [resolvable:$false] %s740_s23 }
  0x46   : > { %s742_s27 = scalar_lea.vmem %s741_s23, 256  ;;  %p743_p8 = scmp.lt.s32.totalorder %s512_s28, %s741_s23 }
  0x47   : > { %p739_p7 = pneg %p738_p6  ;;  %p744_p10 = scmp.lt.s32.totalorder %s742_s27, %s736_s22 }
  0x49   : > { %p745_p11 = por %p744_p10, %p743_p8 }
  0x4b   : > { %p746_p12 = pnand %p745_p11, %p739_p7 }
  0xbb   : > { %v369_v8 = vpop.trf.xlu0 }
  0xbc   : > { %646 = vmatmul.mubr.msk.f32.vlgmr.msra.gmra.mxu0 %vm385_vm3, %v369_v8 }
 0x17c   : > { %v459_v9 = vpop.f32.mrf.mxu0 }
 0x17d   : > { %v460_v11 = vadd.f32 %v459_v9, %v342_v3 }
 0x17e   : > { %v647_v12 = vpop.f32.mrf.mxu0 }
 0x17f   : > { %v463_v13 = vadd.f32 %v460_v11, %v352_v10 }
 0x181   : > { %v465_v14 = vsel %vm464_vm4, %v463_v13, 0.0 }
 0x182   : > { %466 = vadd.xlane.f32.xlu0 %v465_v14 }
 0x20b   : > { %v467_v15 = vpop.xlane.xlu0 %466 }
 0x20c   : > { %v469_v16 = vmul.f32 0.03125, %v467_v15 }
 0x20e   : > { %v470_v17 = vsub.f32 %v463_v13, %v469_v16 }
 0x210   : > { %v471_v18 = vmul.f32 %v470_v17, %v470_v17 }
 0x212   : > { %v472_v19 = vsel %vm464_vm4, %v471_v18, 0.0 }
 0x213   : > { %473 = vadd.xlane.f32.xlu1 %v472_v19 }
 0x29c   : > { %v474_v20 = vpop.xlane.xlu1 %473 }
 0x29d   : > { %v475_v21 = vmul.f32 0.03125, %v474_v20 }
 0x29f   : > { %v476_v22 = vadd.f32 1e-12, %v475_v21 }
 0x2a1   : > { %722 = vrsqrt.f32 %v476_v22 }
 0x2ae   : > { %v723_v23 = vpop.eup %722 }
 0x2af   : > { %v480_v25 = vmul.f32 %v723_v23, %v470_v17 }
 0x2b1   : > { %v487_v27 = vmul.f32 %v634_v24, %v480_v25 }
 0x2b3   : > { %v494_v28 = vadd.f32 %v635_v26, %v487_v27 }
 0x2b5   : > { %495 = vst.msk [vmem:[%s256_s25] sm:$0xff] %vm464_vm4, %v494_v28 }
 0x2b6   : > { %749 = shalt.err (!%p746_p12)
}
 0x2b7   : > { %s750_s9 = scalar_lea.hbm %s509_s14, 128  ;;  %s754_s13 = scalar_lea.hbm %s1017_s7, 256 }
 0x2b8   : > { %p751_p0 = scmp.ne.s32.totalorder %s509_s14, %s750_s9  ;;  %p755_p3 = scmp.lt.s32.totalorder %s509_s14, %s1017_s7 }
 0x2b9   : > { %p756_p4 = scmp.lt.s32.totalorder %s754_s13, %s750_s9 }
 0x2ba   : > { %p752_p1 = pnand %p751_p0, %p921_p9 }
 0x2bb   : > { %p757_p5 = por %p756_p4, %p755_p3 }
 0x2bc   : > { %p753_p2 = pneg %p752_p1 }
 0x2be   : > { %p758_p6 = pnand %p757_p5, %p753_p2 }
 0x2c0   : > { %761 = shalt.err (!%p758_p6)
}
 0x2c1   : > { %648 = dma.vmem_to_hbm [thread:$0]  (%p921_p9), %s512_s28, 128, %s509_s14, %s497_s21  }
 0x2c2 PF: > { %p654_p7 = scmp.ge.s32.totalorder %s824_s10, 2  ;;  %s523_s24 = sand.u32 1, %s804_s29  }
 0x2c3   : > { %s524_s26 = scalar_lea.sflag [#allocation7], %s523_s24 }
 0x2c4   : > { %p651_p8 = pnand %p654_p7, %p928_p13 }
 0x2c6   : > { %p652_p10 = pneg %p651_p8 }
 0x2c8   : > { %799 = dma.done.wait (%p652_p10), %s524_s26, 128  }
 0x2c9   : > { %801 = vsyncadd (%p652_p10), %s524_s26, 4294967168  ;;  %s26_s10 = sadd.s32 1, %s824_s10   ;;  %s1027_s11 = sld [smem:[#allocation14_spill]] }
 0x2ca   : > { %p23_p11 = scmp.ge.s32.totalorder %s26_s10, 4   ;;  %s1028_s8 = sld [smem:[#allocation12_spill]] }
 0x2cb   : > { %s1029_s9 = sld [smem:[#allocation13_spill]]  ;;  %s1030_s29 = smov %s808_s30 }
 0x2cc   : > { %s1031_s30 = smov %s812_s0  ;;  %25 = sbr.rel (!%p23_p11) target bundleno = 19 (0x13), region = 156 }
 0x2cf   : > { %s1032_s0 = smov %s1027_s11 }
 0x2d1   :  { %529 = vsyncpa [#allocation7], 1 }
 0x2d2   :  { %531 = vsyncpa [#allocation7 + $0x1], 1 }
 0x2d3   :  { %532 = vsyncmov [#allocation3] }
 0x2d6   :  { %s533_s15 = vpop.sfrf %532 }
 0x2d7   :  { %p640_p9 = scmp.ne.s32.totalorder %s533_s15, 0 }
 0x2d9   :  { %537 = shalt.err (%p640_p9)  }

</bundles_post_ra>
